<compile_context>
chip_gen: v6e
topology: v6e:2x2x1
jax: 0.10.0
libtpu: 0.0.40
codegen_flags: <defaults>
</compile_context>

<pallas_src>
import functools

import jax
import jax.numpy as jnp
from jax import lax
from jax.experimental import pallas as pl
from jax.experimental.pallas import tpu as pltpu


# ----------------------------------------------------------------------------
# Single-step kernel (exact module semantics)
# ----------------------------------------------------------------------------
def gru_cell_kernel(x_ref, h_ref, wi_ref, bi_ref, wh_ref, out_ref):
    h32 = h_ref[...].astype(jnp.float32)

    # bf16 weights go straight to the MXU with f32 accumulation; only the small
    # (B, H) / (B, I) activations are cast to bf16 at the MXU boundary.
    # Larger-K dot first: K = H = 128 exactly fills v5e's 128-deep MXU.
    hh = jnp.dot(h_ref[...].astype(jnp.bfloat16), wh_ref[...],
                 preferred_element_type=jnp.float32)                     # (B, 3H)
    xi = jnp.dot(x_ref[...].astype(jnp.bfloat16), wi_ref[...],
                 preferred_element_type=jnp.float32)                     # (B, 3H)
    xi = xi + bi_ref[...].astype(jnp.float32)

    H = h32.shape[-1]   # gate slices are lane-aligned (H % 128 == 0 asserted)
    r = jax.nn.sigmoid(xi[:, :H] + hh[:, :H])
    z = jax.nn.sigmoid(xi[:, H:2 * H] + hh[:, H:2 * H])
    n = jnp.tanh(xi[:, 2 * H:] + r * hh[:, 2 * H:])
    out_ref[...] = ((1.0 - z) * n + z * h32).astype(out_ref.dtype)


def gru_cell_forward(incoming, state, w_in, b_in, w_h):
    """Pallas GRUCell single-step forward -> (output, new_state)."""
    B, I = incoming.shape
    H = state.shape[-1]
    assert H % 128 == 0, "gate slices must start on 128-lane boundaries"
    b_in2d = b_in.reshape(1, -1)

    nbytes = lambda a: a.size * a.dtype.itemsize
    cost = pl.CostEstimate(
        flops=2 * B * (I + H) * 3 * H,
        transcendentals=3 * B * H,
        bytes_accessed=(nbytes(w_in) + nbytes(w_h) + nbytes(b_in2d)
                        + nbytes(incoming) + 2 * nbytes(state)),
    )

    vmem = pl.BlockSpec(memory_space=pltpu.MemorySpace.VMEM)
    out = pl.pallas_call(
        gru_cell_kernel,
        out_shape=jax.ShapeDtypeStruct((B, H), state.dtype),
        # Whole-array VMEM blocks, no grid: no pipelining machinery for 1 step.
        in_specs=[vmem] * 5,
        out_specs=vmem,
        cost_estimate=cost,
    )(incoming, state, w_in, b_in2d, w_h)
    # output and new_state are the same tensor in the reference module.
    return out, out


# ----------------------------------------------------------------------------
# Multi-step kernel: chunked recurrence, fori_loop inside the kernel body,
# W_h / h carry VMEM-resident across all timesteps.
# ----------------------------------------------------------------------------
def gru_seq_kernel(xi_ref, h0_ref, wh_ref, out_ref, hT_ref, h_scratch,
                   *, chunk, total_steps):
    c = pl.program_id(0)

    @pl.when(c == 0)
    def _init():
        h_scratch[...] = h0_ref[...].astype(jnp.float32)

    wh = wh_ref[...]                  # bf16, fed straight to the MXU every step
    H = h_scratch.shape[-1]
    # Handle a possibly-partial last chunk.
    steps = jnp.minimum(chunk, total_steps - c * chunk)

    def step(t, h):
        xi = xi_ref[t]                # (B, 3H) f32, precomputed x@Wi + b
        hh = jnp.dot(h.astype(jnp.bfloat16), wh,
                     preferred_element_type=jnp.float32)
        r = jax.nn.sigmoid(xi[:, :H] + hh[:, :H])
        z = jax.nn.sigmoid(xi[:, H:2 * H] + hh[:, H:2 * H])
        n = jnp.tanh(xi[:, 2 * H:] + r * hh[:, 2 * H:])
        h_new = (1.0 - z) * n + z * h
        out_ref[t] = h_new.astype(out_ref.dtype)
        return h_new

    h_final = lax.fori_loop(0, steps, step, h_scratch[...])
    h_scratch[...] = h_final          # carry across chunks

    @pl.when(c == pl.num_programs(0) - 1)
    def _finalize():
        hT_ref[...] = h_final.astype(hT_ref.dtype)


def gru_sequence_forward(x_seq, h0, w_in, b_in, w_h, *, chunk=64):
    """Run the GRUCell over x_seq of shape (T, B, I).

    Returns (outputs, final_state); outputs[t] is the hidden state after step t.
    """
    T, B, I = x_seq.shape
    H = h0.shape[-1]
    assert H % 128 == 0, "gate slices must start on 128-lane boundaries"
    chunk = min(chunk, T)
    num_chunks = pl.cdiv(T, chunk)

    # Hoist the input projection out of the recurrence: one dense,
    # MXU-friendly (T*B, I) x (I, 3H) matmul instead of T tiny K=I dots.
    xi_all = (
        jnp.dot(x_seq.reshape(T * B, I).astype(jnp.bfloat16), w_in,
                preferred_element_type=jnp.float32)
        + b_in.astype(jnp.float32)
    ).reshape(T, B, 3 * H)

    nbytes = lambda a: a.size * a.dtype.itemsize
    cost = pl.CostEstimate(
        flops=2 * T * B * H * 3 * H,
        transcendentals=3 * T * B * H,
        bytes_accessed=(nbytes(w_h) + nbytes(xi_all) + nbytes(h0)
                        + (T + 1) * B * H * 4),
    )

    kernel = functools.partial(gru_seq_kernel, chunk=chunk, total_steps=T)
    outputs, h_final = pl.pallas_call(
        kernel,
        out_shape=(jax.ShapeDtypeStruct((T, B, H), h0.dtype),
                   jax.ShapeDtypeStruct((B, H), h0.dtype)),
        grid=(num_chunks,),
        in_specs=[
            # Per-chunk slab of precomputed input projections.
            pl.BlockSpec((chunk, B, 3 * H), lambda c: (c, 0, 0)),
            # h0 and W_h: constant block index => DMA'd once, VMEM-resident.
            pl.BlockSpec((B, H), lambda c: (0, 0)),
            pl.BlockSpec((H, 3 * H), lambda c: (0, 0)),
        ],
        out_specs=(
            pl.BlockSpec((chunk, B, H), lambda c: (c, 0, 0)),
            # Final state returned straight from the kernel (no host-side slice).
            pl.BlockSpec((B, H), lambda c: (0, 0)),
        ),
        scratch_shapes=[pltpu.VMEM((B, H), jnp.float32)],
        compiler_params=pltpu.CompilerParams(
            # True recurrence over chunks -> "arbitrary". At B=8 there is no
            # independent axis worth marking "parallel" for v7x's 2nd TC.
            dimension_semantics=("arbitrary",)),
        cost_estimate=cost,
    )(xi_all, h0, w_h)

    return outputs, h_final


# ----------------------------------------------------------------------------
# Matched-precision pure-JAX references (bf16 MXU operands, f32 gate math)
# ----------------------------------------------------------------------------
def gru_cell_reference(incoming, state, w_in, b_in, w_h):
    xi = jnp.dot(incoming.astype(jnp.bfloat16), w_in,
                 preferred_element_type=jnp.float32) + b_in.astype(jnp.float32)
    hh = jnp.dot(state.astype(jnp.bfloat16), w_h,
                 preferred_element_type=jnp.float32)
    H = state.shape[-1]
    r = jax.nn.sigmoid(xi[:, :H] + hh[:, :H])
    z = jax.nn.sigmoid(xi[:, H:2 * H] + hh[:, H:2 * H])
    n = jnp.tanh(xi[:, 2 * H:] + r * hh[:, 2 * H:])
    return (1.0 - z) * n + z * state.astype(jnp.float32)


def gru_sequence_reference(x_seq, h0, w_in, b_in, w_h):
    h = h0.astype(jnp.float32)
    outs = []
    for t in range(x_seq.shape[0]):
        h = gru_cell_reference(x_seq[t], h, w_in, b_in, w_h)
        outs.append(h)
    return jnp.stack(outs, axis=0), h


if __name__ == "__main__":
    key = jax.random.PRNGKey(0)
    B, INPUT_SIZE, HIDDEN_SIZE, T = 8, 64, 128, 6

    k1, k2, k3, k4, k5 = jax.random.split(key, 5)
    # Parameters stored in bf16 (halves HBM/VMEM weight footprint). Shapes
    # match the nn.Linear layers, stored transposed: (in_features, 3*hidden).
    w_in = (jax.random.normal(k1, (INPUT_SIZE, 3 * HIDDEN_SIZE), jnp.float32)
            * 0.1).astype(jnp.bfloat16)
    b_in = (jax.random.normal(k2, (3 * HIDDEN_SIZE,), jnp.float32)
            * 0.1).astype(jnp.bfloat16)
    w_h = (jax.random.normal(k3, (HIDDEN_SIZE, 3 * HIDDEN_SIZE), jnp.float32)
           * 0.1).astype(jnp.bfloat16)

    # ---- single-step forward (exact module semantics) ----
    incoming = jax.random.normal(k4, (B, INPUT_SIZE), jnp.float32)
    state = jax.random.normal(jax.random.PRNGKey(1), (B, HIDDEN_SIZE), jnp.float32)

    output, new_state = gru_cell_forward(incoming, state, w_in, b_in, w_h)
    jax.block_until_ready(output)

    ref = gru_cell_reference(incoming, state, w_in, b_in, w_h)
    assert jnp.allclose(output, ref, atol=2e-3, rtol=2e-3), "single-step mismatch"
    assert jnp.array_equal(new_state, output), "output and new_state must match"

    # ---- optimized multi-step path (single grid step at T=6) ----
    x_seq = jax.random.normal(k5, (T, B, INPUT_SIZE), jnp.float32)
    h0 = jnp.zeros((B, HIDDEN_SIZE), jnp.float32)   # GRUCell.init()

    seq_out, seq_final = gru_sequence_forward(x_seq, h0, w_in, b_in, w_h)
    jax.block_until_ready(seq_out)

    ref_out, ref_final = gru_sequence_reference(x_seq, h0, w_in, b_in, w_h)
    assert jnp.allclose(seq_out, ref_out, atol=5e-3, rtol=5e-3), "sequence mismatch"
    assert jnp.allclose(seq_final, ref_final, atol=5e-3, rtol=5e-3), "final state mismatch"

    print("KERNEL_OK")
</pallas_src>

<mosaic_0001>
module attributes {stable_mosaic.version = 11 : i64} {
  func.func @gru_cell_kernel(%arg0: memref<8x64xf32, #tpu.memory_space<vmem>>, %arg1: memref<8x128xf32, #tpu.memory_space<vmem>>, %arg2: memref<64x384xbf16, #tpu.memory_space<vmem>>, %arg3: memref<1x384xbf16, #tpu.memory_space<vmem>>, %arg4: memref<128x384xbf16, #tpu.memory_space<vmem>>, %arg5: memref<8x128xf32, #tpu.memory_space<vmem>>) attributes {dimension_semantics = [], scalar_prefetch = 0 : i64, scratch_operands = 0 : i64, tpu.core_type = #tpu.core_type<tc>} {
    %c0 = arith.constant 0 : index
    %c0_0 = arith.constant 0 : index
    %0 = vector.load %arg1[%c0, %c0_0] : memref<8x128xf32, #tpu.memory_space<vmem>>, vector<8x128xf32>
    %c0_1 = arith.constant 0 : index
    %c0_2 = arith.constant 0 : index
    %1 = vector.load %arg1[%c0_1, %c0_2] : memref<8x128xf32, #tpu.memory_space<vmem>>, vector<8x128xf32>
    %2 = arith.truncf %1 : vector<8x128xf32> to vector<8x128xbf16>
    %c0_3 = arith.constant 0 : index
    %c0_4 = arith.constant 0 : index
    %3 = vector.load %arg4[%c0_3, %c0_4] : memref<128x384xbf16, #tpu.memory_space<vmem>>, vector<128x384xbf16>
    %cst = arith.constant dense<0.000000e+00> : vector<8x384xf32>
    %4 = tpu.matmul %2, %3, %cst {dimension_numbers = #tpu.dot_dimension_numbers<[1], [0], [0], [1], [0, 0, 1, 1], [], []>} : vector<8x128xbf16>, vector<128x384xbf16>, vector<8x384xf32> -> vector<8x384xf32>
    %c0_5 = arith.constant 0 : index
    %c0_6 = arith.constant 0 : index
    %5 = vector.load %arg0[%c0_5, %c0_6] : memref<8x64xf32, #tpu.memory_space<vmem>>, vector<8x64xf32>
    %6 = arith.truncf %5 : vector<8x64xf32> to vector<8x64xbf16>
    %c0_7 = arith.constant 0 : index
    %c0_8 = arith.constant 0 : index
    %7 = vector.load %arg2[%c0_7, %c0_8] : memref<64x384xbf16, #tpu.memory_space<vmem>>, vector<64x384xbf16>
    %cst_9 = arith.constant dense<0.000000e+00> : vector<8x384xf32>
    %8 = tpu.matmul %6, %7, %cst_9 {dimension_numbers = #tpu.dot_dimension_numbers<[1], [0], [0], [1], [0, 0, 1, 1], [], []>} : vector<8x64xbf16>, vector<64x384xbf16>, vector<8x384xf32> -> vector<8x384xf32>
    %c0_10 = arith.constant 0 : index
    %c0_11 = arith.constant 0 : index
    %9 = vector.load %arg3[%c0_10, %c0_11] : memref<1x384xbf16, #tpu.memory_space<vmem>>, vector<1x384xbf16>
    %10 = arith.extf %9 : vector<1x384xbf16> to vector<1x384xf32>
    %11 = vector.broadcast %10 : vector<1x384xf32> to vector<8x384xf32>
    %12 = arith.addf %8, %11 : vector<8x384xf32>
    %13 = vector.extract_strided_slice %12 {offsets = [0, 0], sizes = [8, 128], strides = [1, 1]} : vector<8x384xf32> to vector<8x128xf32>
    %14 = vector.extract_strided_slice %4 {offsets = [0, 0], sizes = [8, 128], strides = [1, 1]} : vector<8x384xf32> to vector<8x128xf32>
    %15 = arith.addf %13, %14 : vector<8x128xf32>
    %16 = arith.negf %15 : vector<8x128xf32>
    %17 = math.exp %16 : vector<8x128xf32>
    %cst_12 = arith.constant 1.000000e+00 : f32
    %18 = vector.broadcast %cst_12 : f32 to vector<8x128xf32>
    %19 = arith.addf %18, %17 : vector<8x128xf32>
    %20 = arith.divf %18, %19 : vector<8x128xf32>
    %21 = vector.extract_strided_slice %12 {offsets = [0, 128], sizes = [8, 128], strides = [1, 1]} : vector<8x384xf32> to vector<8x128xf32>
    %22 = vector.extract_strided_slice %4 {offsets = [0, 128], sizes = [8, 128], strides = [1, 1]} : vector<8x384xf32> to vector<8x128xf32>
    %23 = arith.addf %21, %22 : vector<8x128xf32>
    %24 = arith.negf %23 : vector<8x128xf32>
    %25 = math.exp %24 : vector<8x128xf32>
    %cst_13 = arith.constant 1.000000e+00 : f32
    %26 = vector.broadcast %cst_13 : f32 to vector<8x128xf32>
    %27 = arith.addf %26, %25 : vector<8x128xf32>
    %28 = arith.divf %26, %27 : vector<8x128xf32>
    %29 = vector.extract_strided_slice %12 {offsets = [0, 256], sizes = [8, 128], strides = [1, 1]} : vector<8x384xf32> to vector<8x128xf32>
    %30 = vector.extract_strided_slice %4 {offsets = [0, 256], sizes = [8, 128], strides = [1, 1]} : vector<8x384xf32> to vector<8x128xf32>
    %31 = arith.mulf %20, %30 : vector<8x128xf32>
    %32 = arith.addf %29, %31 : vector<8x128xf32>
    %33 = math.tanh %32 : vector<8x128xf32>
    %cst_14 = arith.constant 1.000000e+00 : f32
    %34 = vector.broadcast %cst_14 : f32 to vector<8x128xf32>
    %35 = arith.subf %34, %28 : vector<8x128xf32>
    %36 = arith.mulf %35, %33 : vector<8x128xf32>
    %37 = arith.mulf %28, %0 : vector<8x128xf32>
    %38 = arith.addf %36, %37 : vector<8x128xf32>
    %c0_15 = arith.constant 0 : index
    %c0_16 = arith.constant 0 : index
    %39 = vector.load %arg5[%c0_15, %c0_16] : memref<8x128xf32, #tpu.memory_space<vmem>>, vector<8x128xf32>
    tpu.vector_store %arg5[%c0_15, %c0_16], %38 {strides = array<i32>} : memref<8x128xf32, #tpu.memory_space<vmem>>, vector<8x128xf32>,
    return
  }
}

</mosaic_0001>

<bundles_post_ra>
// kernel: tpu_custom_call.1
= control target key start
LH: loop header
LB: loop body
LE: loop exit
PB: predicated region body
PF: predicated region fallthrough
CT: control target
= control target key end

     0   :  { %10 = vsyncpa [#allocation3], 0  ;;  %s895_s0 = inlined_call_operand.hbm [shape: f32[8,64], index: 0, kind: input, shape index: {}]   ;;  %s896_s1 = inlined_call_operand.hbm [shape: f32[8,128], index: 1, kind: input, shape index: {}]   ;;  %s897_s2 = inlined_call_operand.hbm [shape: bf16[64,384], index: 2, kind: input, shape index: {}]   ;;  %s898_s3 = inlined_call_operand.vmem [shape: bf16[1,384], index: 3, kind: input, shape index: {}]   ;;  %s899_s4 = inlined_call_operand.hbm [shape: bf16[128,384], index: 4, kind: input, shape index: {}]   ;;  %s900_s5 = inlined_call_operand.hbm [shape: f32[8,128], index: 5, kind: output, shape index: {}]  }
   0x1   :  { %11 = vsyncpa [#allocation6], 0 }
   0x2   :  { %12 = vsyncpa [#allocation9], 0 }
   0x3   :  { %13 = vsyncpa [#allocation4], 0  ;;  %s814_s18 = smov [#allocation5]   ;;  %s815_s20 = smov [#allocation2]  }
   0x4   :  { %s30_s19 = sshll.u32 %s814_s18, 4  ;;  %s20_s21 = sshll.u32 %s815_s20, 4  ;;  %s31_s19 = int_to_ptr.vmem [resolvable:$true] %s30_s19  ;;  %s21_s21 = int_to_ptr.vmem [resolvable:$true] %s20_s21 }
   0x5   :  { %s714_s22 = scalar_lea.vmem %s31_s19, 128  ;;  %p719_p1 = scmp.lt.s32.totalorder %s31_s19, %s31_s19 }
   0x6   :  { %p715_p0 = scmp.ne.s32.totalorder %s31_s19, %s714_s22  ;;  %p720_p2 = scmp.lt.s32.totalorder %s714_s22, %s714_s22 }
   0x8   :  { %p721_p3 = por %p720_p2, %p719_p1 }
   0xa   :  { %p722_p4 = pnand %p721_p3, %p715_p0 }
   0xc   :  { %725 = shalt.err (!%p722_p4)
}
   0xd   :  { %33 = dma.hbm_to_vmem [thread:$0]  %s896_s1, 128, %s31_s19, [#allocation6]  }
   0xe   :  { %s734_s25 = scalar_lea.vmem %s21_s21, 128  ;;  %p739_p6 = scmp.lt.s32.totalorder %s21_s21, %s21_s21 }
   0xf   :  { %p735_p5 = scmp.ne.s32.totalorder %s21_s21, %s734_s25  ;;  %p740_p7 = scmp.lt.s32.totalorder %s734_s25, %s734_s25 }
  0x11   :  { %p741_p8 = por %p740_p7, %p739_p6 }
  0x13   :  { %p742_p9 = pnand %p741_p8, %p735_p5 }
  0x15   :  { %745 = shalt.err (!%p742_p9)
}
  0x16   :  { %23 = dma.hbm_to_vmem [thread:$0]  %s895_s0, 128, %s21_s21, [#allocation3]  }
  0x17   :  { %s816_s28 = smov [#allocation7]  }
  0x18   :  { %s39_s29 = sshll.u32 %s816_s28, 4  ;;  %s40_s29 = int_to_ptr.vmem [resolvable:$true] %s39_s29 }
  0x19   :  { %s754_s30 = scalar_lea.vmem %s40_s29, 1536  ;;  %p759_p11 = scmp.lt.s32.totalorder %s40_s29, %s40_s29 }
  0x1a   :  { %p755_p10 = scmp.ne.s32.totalorder %s40_s29, %s754_s30  ;;  %p760_p12 = scmp.lt.s32.totalorder %s754_s30, %s754_s30 }
  0x1c   :  { %p761_p13 = por %p760_p12, %p759_p11 }
  0x1e   :  { %p762_p0 = pnand %p761_p13, %p755_p10 }
  0x20   :  { %765 = shalt.err (!%p762_p0)
}
  0x21   :  { %s817_s1 = smov 192   ;;  %s818_s6 = smov 12  }
  0x22   :  { %45 = dma.hbm_to_vmem [thread:$0]  %s897_s2, 1536, %s40_s29, [#allocation6], %s817_s1, %s817_s1, %s818_s6  }
  0x23   :  { %s819_s9 = smov [#allocation8]  }
  0x24   :  { %s53_s10 = sshll.u32 %s819_s9, 4  ;;  %s54_s10 = int_to_ptr.vmem [resolvable:$true] %s53_s10 }
  0x25   :  { %s774_s0 = scalar_lea.vmem %s54_s10, 3072  ;;  %p779_p2 = scmp.lt.s32.totalorder %s54_s10, %s54_s10 }
  0x26   :  { %p775_p1 = scmp.ne.s32.totalorder %s54_s10, %s774_s0  ;;  %p780_p3 = scmp.lt.s32.totalorder %s774_s0, %s774_s0 }
  0x28   :  { %p781_p4 = por %p780_p3, %p779_p2 }
  0x2a   :  { %p782_p5 = pnand %p781_p4, %p775_p1 }
  0x2c   :  { %785 = shalt.err (!%p782_p5)
}
  0x2d   :  { %59 = dma.hbm_to_vmem [thread:$0]  %s899_s4, 3072, %s54_s10, [#allocation9], %s817_s1, %s817_s1, %s818_s6  }
  0x2e   :  { %806 = dma.done.wait [#allocation3], 128  }
  0x2f   :  { %807 = vsyncadd [#allocation3], 4294967168 }
  0x30   :  { %808 = dma.done.wait [#allocation6], 1664  }
  0x31   :  { %809 = vsyncadd [#allocation6], 4294965632 }
  0x32   :  { %810 = dma.done.wait [#allocation9], 3072  }
  0x33   :  { %811 = vsyncadd [#allocation9], 4294964224  ;;  %v820_v0 = vmov 0.0   ;;  %v821_v1 = vmov 0   ;;  %vm822_vm0 = vmmov 0   ;;  %v874_v23 = vld [vmem:[#allocation5] sm:$0xff]  ;;  %v337_v42 = vlaneseq }
  0x34   :  { %606 = vmatprep.subr.bf16.mxu1 %v820_v0  ;;  %267 = vmatprep.mubr.bf16.mxu0 %v821_v1  ;;  %v648_v2 = vld [vmem:[#allocation8 + $0xac] ss:$12 sps:$4 sm:$0xff]   ;;  %v650_v3 = vld [vmem:[#allocation8 + $0xa8] ss:$12 sps:$4 sm:$0xff]   ;;  %v653_v5 = vld [vmem:[#allocation8 + $0x90] ss:$12 sps:$4 sm:$0xff]   ;;  %v74_v26 = vpack.c.bf16 %v874_v23, %v874_v23 }
  0x35   :  { %622 = vmatprep.mubr.msk.bf16.mxu1 %vm822_vm0, %v820_v0  ;;  %235 = vmatprep.subr.bf16.mxu0 %v648_v2  ;;  %v651_v4 = vld [vmem:[#allocation8 + $0x94] ss:$12 sps:$4 sm:$0xff]   ;;  %v654_v6 = vld [vmem:[#allocation8 + $0x7c] ss:$12 sps:$4 sm:$0xff]   ;;  %v656_v7 = vld [vmem:[#allocation8 + $0x78] ss:$12 sps:$4 sm:$0xff]  }
  0x36   :  { %236 = vmatpush1.bf16.msra.mxu0 %v650_v3  ;;  %v657_v8 = vld [vmem:[#allocation8 + $0x64] ss:$12 sps:$4 sm:$0xff]   ;;  %v659_v9 = vld [vmem:[#allocation8 + $0x60] ss:$12 sps:$4 sm:$0xff]   ;;  %v662_v13 = vld [vmem:[#allocation8 + $0x48] ss:$12 sps:$4 sm:$0xff]  }
  0x37   :  { %237 = vmatprep.subr.bf16.mxu0 %v651_v4  ;;  %v672_v10 = vld [vmem:[#allocation8 + $0xb0] ss:$12 sps:$4 sm:$0xff]   ;;  %v660_v11 = vld [vmem:[#allocation8 + $0x4c] ss:$12 sps:$4 sm:$0xff]   ;;  %v663_v14 = vld [vmem:[#allocation8 + $0x34] ss:$12 sps:$4 sm:$0xff]  }
  0x38   :  { %607 = vmatpush3.bf16.msra.mxu1 %v672_v10  ;;  %v676_v12 = vld [vmem:[#allocation8 + $0x98] ss:$12 sps:$4 sm:$0xff]   ;;  %v680_v15 = vld [vmem:[#allocation8 + $0x80] ss:$12 sps:$4 sm:$0xff]   ;;  %v665_v16 = vld [vmem:[#allocation8 + $0x30] ss:$12 sps:$4 sm:$0xff]  }
  0x39   :  { %608 = vmatprep.subr.bf16.mxu1 %v820_v0  ;;  %v666_v17 = vld [vmem:[#allocation8 + $0x1c] ss:$12 sps:$4 sm:$0xff]   ;;  %v668_v19 = vld [vmem:[#allocation8 + $0x18] ss:$12 sps:$4 sm:$0xff]   ;;  %v671_v22 = vld [vmem:[#allocation8] ss:$12 sps:$4 sm:$0xff]  }
  0x3a   :  { %238 = vmatpush1.bf16.msra.mxu0 %v653_v5  ;;  %v684_v18 = vld [vmem:[#allocation8 + $0x68] ss:$12 sps:$4 sm:$0xff]   ;;  %v669_v20 = vld [vmem:[#allocation8 + $0x4] ss:$12 sps:$4 sm:$0xff]   ;;  %v675_v24 = vld [vmem:[#allocation7 + $0x4c] ss:$12 sps:$4 sm:$0xff]  }
  0x3b   :  { %239 = vmatprep.subr.bf16.mxu0 %v654_v6  ;;  %v688_v21 = vld [vmem:[#allocation8 + $0x50] ss:$12 sps:$4 sm:$0xff]   ;;  %v689_v25 = vld [vmem:[#allocation8 + $0x38] ss:$12 sps:$4 sm:$0xff]   ;;  %v673_v27 = vld [vmem:[#allocation7 + $0x48] ss:$12 sps:$4 sm:$0xff]  }
  0x3c   :  { %609 = vmatpush3.bf16.msra.mxu1 %v676_v12  ;;  %v679_v28 = vld [vmem:[#allocation7 + $0x34] ss:$12 sps:$4 sm:$0xff]   ;;  %v677_v30 = vld [vmem:[#allocation7 + $0x30] ss:$12 sps:$4 sm:$0xff]   ;;  %v681_v33 = vld [vmem:[#allocation7 + $0x18] ss:$12 sps:$4 sm:$0xff]  }
  0x3d   :  { %610 = vmatprep.subr.bf16.mxu1 %v820_v0  ;;  %v690_v29 = vld [vmem:[#allocation8 + $0x20] ss:$12 sps:$4 sm:$0xff]   ;;  %v683_v31 = vld [vmem:[#allocation7 + $0x1c] ss:$12 sps:$4 sm:$0xff]   ;;  %v687_v34 = vld [vmem:[#allocation7 + $0x4] ss:$12 sps:$4 sm:$0xff]  }
  0x3e   :  { %240 = vmatpush1.bf16.msra.mxu0 %v656_v7  ;;  %v691_v32 = vld [vmem:[#allocation8 + $0x8] ss:$12 sps:$4 sm:$0xff]   ;;  %v692_v35 = vld [vmem:[#allocation7 + $0x50] ss:$12 sps:$4 sm:$0xff]   ;;  %v685_v36 = vld [vmem:[#allocation7] ss:$12 sps:$4 sm:$0xff]  }
  0x3f   :  { %241 = vmatprep.subr.bf16.mxu0 %v657_v8  ;;  %v316_v37 = vld [vmem:[#allocation2] sm:$0xff]  ;;  %v693_v38 = vld [vmem:[#allocation7 + $0x38] ss:$12 sps:$4 sm:$0xff]   ;;  %vm428_vm1 = vcmask 523264   ;;  %v694_v40 = vld [vmem:[#allocation7 + $0x20] ss:$12 sps:$4 sm:$0xff]  }
  0x40   :  { %611 = vmatpush3.bf16.msra.mxu1 %v680_v15  ;;  %v317_v39 = vpack.c.bf16 %v316_v37, %v316_v37  ;;  %v695_v41 = vld [vmem:[#allocation7 + $0x8] ss:$12 sps:$4 sm:$0xff]   ;;  %v338_v44 = vshrl.u32 %v337_v42, 7  ;;  %v334_v46 = vld [vmem:[%s898_s3] sm:$0x7]  ;;  %s823_s3 = smov [#allocation10]  }
  0x41   :  { %612 = vmatprep.subr.bf16.mxu1 %v820_v0  ;;  %v335_v48 = vunpack.c.l.bf16 %v334_v46  ;;  %s541_s13 = sshll.u32 %s823_s3, 4  ;;  %s542_s13 = int_to_ptr.vmem [resolvable:$true] %s541_s13 }
  0x42   :  { %242 = vmatpush1.bf16.msra.mxu0 %v659_v9  ;;  %v339_v49 = vsub.s32 0, %v338_v44  ;;  %v343_v52 = vsub.s32 2, %v338_v44  ;;  %v347_v12 = vsub.s32 4, %v338_v44  ;;  %s786_s14 = scalar_lea.vmem %s542_s13, 128  ;;  %p791_p7 = scmp.lt.s32.totalorder %s542_s13, %s542_s13 }
  0x43   :  { %243 = vmatprep.subr.bf16.mxu0 %v660_v11  ;;  %p787_p6 = scmp.ne.s32.totalorder %s542_s13, %s786_s14  ;;  %p792_p8 = scmp.lt.s32.totalorder %s786_s14, %s786_s14 }
  0x44   :  { %613 = vmatpush3.bf16.msra.mxu1 %v684_v18  ;;  %v340_v51 = vrot.slane %v335_v48, %v339_v49  ;;  %v344_v56 = vrot.slane %v335_v48, %v343_v52 }
  0x45   :  { %614 = vmatprep.subr.bf16.mxu1 %v820_v0  ;;  %p793_p9 = por %p792_p8, %p791_p7 }
  0x46   :  { %244 = vmatpush1.bf16.msra.mxu0 %v662_v13  ;;  %v355_v55 = vrot.slane %v340_v51, %v339_v49  ;;  %v359_v61 = vrot.slane %v344_v56, %v339_v49  ;;  %v348_v13 = vrot.slane %v335_v48, %v347_v12 }
  0x47   :  { %245 = vmatprep.subr.bf16.mxu0 %v663_v14  ;;  %p794_p10 = pnand %p793_p9, %p787_p6 }
  0x48   :  { %615 = vmatpush3.bf16.msra.mxu1 %v688_v21  ;;  %v363_v15 = vrot.slane %v348_v13, %v339_v49 }
  0x49   :  { %616 = vmatprep.subr.bf16.mxu1 %v820_v0 }
  0x4a   :  { %246 = vmatpush1.bf16.msra.mxu0 %v665_v16 }
  0x4b   :  { %247 = vmatprep.subr.bf16.mxu0 %v666_v17 }
  0x4c   :  { %617 = vmatpush3.bf16.msra.mxu1 %v689_v25 }
  0x4d   :  { %618 = vmatprep.subr.bf16.mxu1 %v820_v0 }
  0x4e   :  { %248 = vmatpush1.bf16.msra.mxu0 %v668_v19 }
  0x4f   :  { %249 = vmatprep.subr.bf16.mxu0 %v669_v20 }
  0x50   :  { %619 = vmatpush3.bf16.msra.mxu1 %v690_v29 }
  0x51   :  { %620 = vmatprep.subr.bf16.mxu1 %v820_v0 }
  0x52   :  { %250 = vmatpush1.bf16.msra.mxu0 %v671_v22 }
  0x53   :  { %440 = vmatprep.subr.bf16.mxu0 %v675_v24 }
  0x54   :  { %621 = vmatpush3.bf16.msra.mxu1 %v691_v32 }
  0x55   :  { %268 = vmatmul.mubr.bf16.vlgmr.msra.gmra.mxu0 %v74_v26  ;;  %626 = vmatprep.subr.bf16.mxu1 %v820_v0 }
  0x56   :  { %441 = vmatpush1.bf16.msra.mxu0 %v673_v27  ;;  %464 = vmatprep.mubr.bf16.mxu0 %v821_v1 }
  0x57   :  { %442 = vmatprep.subr.bf16.mxu0 %v679_v28  ;;  %623 = vmatmul.mubr.bf16.vlgmr.msra.gmra.mxu1 %v74_v26 }
  0x58   :  { %627 = vmatpush3.bf16.msra.mxu1 %v692_v35  ;;  %634 = vmatprep.mubr.msk.bf16.mxu1 %vm822_vm0, %v820_v0 }
  0x59   :  { %628 = vmatprep.subr.bf16.mxu1 %v820_v0 }
  0x5a   :  { %443 = vmatpush1.bf16.msra.mxu0 %v677_v30 }
  0x5b   :  { %444 = vmatprep.subr.bf16.mxu0 %v683_v31 }
  0x5c   :  { %629 = vmatpush3.bf16.msra.mxu1 %v693_v38 }
  0x5d   :  { %630 = vmatprep.subr.bf16.mxu1 %v820_v0 }
  0x5e   :  { %445 = vmatpush1.bf16.msra.mxu0 %v681_v33 }
  0x5f   :  { %446 = vmatprep.subr.bf16.mxu0 %v687_v34 }
  0x60   :  { %631 = vmatpush3.bf16.msra.mxu1 %v694_v40 }
  0x61   :  { %632 = vmatprep.subr.bf16.mxu1 %v820_v0 }
  0x62   :  { %447 = vmatpush1.bf16.msra.mxu0 %v685_v36 }
  0x64   :  { %633 = vmatpush3.bf16.msra.mxu1 %v695_v41 }
  0x65   :  { %588 = vmatmul.mubr.msk.bf16.vlgmr.msra.gmra.mxu0 %vm428_vm1, %v317_v39 }
  0x67   :  { %635 = vmatmul.mubr.msk.bf16.vlgmr.msra.gmra.mxu1 %vm428_vm1, %v317_v39 }
 0x115   :  { %v269_v43 = vpop.f32.mrf.mxu0 }
 0x117   :  { %v271_v45 = vpop.f32.mrf.mxu0  ;;  %v310_v53 = vpop.f32.mrf.mxu1 }
 0x119   :  { %v273_v47 = vpop.f32.mrf.mxu0  ;;  %v624_v54 = vpop.f32.mrf.mxu1 }
 0x11b   :  { %v274_v50 = vpop.f32.mrf.mxu0  ;;  %v313_v57 = vpop.f32.mrf.mxu1 }
 0x11d   :  { %v625_v59 = vpop.f32.mrf.mxu1 }
 0x125   :  { %v466_v58 = vpop.f32.mrf.mxu0 }
 0x126   :  { %v467_v60 = vadd.f32 %v466_v58, %v355_v55 }
 0x127   :  { %v468_v62 = vpop.f32.mrf.mxu0  ;;  %v507_v5 = vpop.f32.mrf.mxu1 }
 0x128   :  { %v513_v63 = vadd.f32 %v467_v60, %v269_v43  ;;  %v469_v2 = vadd.f32 %v468_v62, %v359_v61  ;;  %v508_v17 = vadd.f32 %v507_v5, %v363_v15 }
 0x129   :  { %v470_v0 = vpop.f32.mrf.mxu0  ;;  %v636_v6 = vpop.f32.mrf.mxu1 }
 0x12a   :  { %v590_v1 = vmul.f32 -1.442695, %v513_v63  ;;  %v520_v4 = vadd.f32 %v469_v2, %v271_v45 }
 0x12b   :  { %v471_v3 = vpop.f32.mrf.mxu0  ;;  %v510_v8 = vpop.f32.mrf.mxu1 }
 0x12c   :  { %696 = vpow2.f32 %v590_v1  ;;  %v591_v7 = vmul.f32 -1.442695, %v520_v4 }
 0x12d   :  { %v637_v9 = vpop.f32.mrf.mxu1 }
 0x12e   :  { %698 = vpow2.f32 %v591_v7 }
 0x139   :  { %v697_v10 = vpop.eup %696 }
 0x13a   :  { %v517_v11 = vadd.f32 1.0, %v697_v10 }
 0x13b   :  { %v699_v14 = vpop.eup %698 }
 0x13c   :  { %700 = vrcp.f32 %v517_v11  ;;  %v524_v16 = vadd.f32 1.0, %v699_v14 }
 0x13e   :  { %702 = vrcp.f32 %v524_v16 }
 0x149   :  { %v701_v18 = vpop.eup %700 }
 0x14a   :  { %v527_v19 = vmul.f32 %v701_v18, %v310_v53 }
 0x14b   :  { %v703_v21 = vpop.eup %702 }
 0x14c   :  { %v528_v20 = vadd.f32 %v527_v19, %v508_v17  ;;  %v530_v22 = vsub.f32 1.0, %v703_v21  ;;  %v532_v26 = vmul.f32 %v703_v21, %v874_v23 }
 0x14e   :  { %704 = vtanh.f32 %v528_v20 }
 0x15b   :  { %v705_v24 = vpop.eup %704 }
 0x15c   :  { %v531_v25 = vmul.f32 %v705_v24, %v530_v22 }
 0x15e   :  { %v533_v27 = vadd.f32 %v532_v26, %v531_v25 }
 0x160   :  { %534 = vst [vmem:[#allocation10] sm:$0xff] %v533_v27 }
 0x161   :  { %797 = shalt.err (!%p794_p10)
}
 0x162   :  { %544 = dma.vmem_to_hbm [thread:$0]  %s542_s13, 128, %s900_s5, [#allocation4]  }
 0x163   :  { %812 = dma.done.wait [#allocation4], 128  }
 0x164   :  { %813 = vsyncadd [#allocation4], 4294967168 }
 0x165   :  { %548 = vsyncpa [#allocation3], 1 }
 0x166   :  { %549 = vsyncpa [#allocation6], 1 }
 0x167   :  { %550 = vsyncpa [#allocation9], 1 }
 0x168   :  { %551 = vsyncpa [#allocation4], 1 }

</bundles_post_ra>
